<compile_context>
chip_gen: v7x
topology: tpu7x:2x2x1
jax: 0.10.0
libtpu: 0.0.40
codegen_flags: <defaults>
</compile_context>

<pallas_src>
import jax
import jax.numpy as jnp
import numpy as np
from jax.experimental import pallas as pl
from jax.experimental.pallas import tpu as pltpu


def upsample_matrix(n_in: int, n_out: int) -> np.ndarray:
    """Dense 1-D bilinear interpolation matrix, align_corners=True semantics."""
    u = np.zeros((n_out, n_in), np.float32)
    if n_in == 1:
        u[:, 0] = 1.0
        return u
    if n_out == 1:
        u[0, 0] = 1.0
        return u
    src = np.arange(n_out, dtype=np.float64) * (n_in - 1) / (n_out - 1)
    i0 = np.clip(np.floor(src).astype(np.int64), 0, n_in - 1)
    i1 = np.clip(i0 + 1, 0, n_in - 1)
    w1 = (src - i0).astype(np.float32)
    w0 = 1.0 - w1
    rows = np.arange(n_out)
    np.add.at(u, (rows, i0), w0)
    np.add.at(u, (rows, i1), w1)
    return u


def make_fused_upsample_matrix(h, w, hout, wout):
    """Returns (Uh, Uw, kron(Uh, Uw)^T) — the fused flattened-spatial operator."""
    uh = upsample_matrix(h, hout)                       # (Hout, H)
    uw = upsample_matrix(w, wout)                       # (Wout, W)
    ut = np.kron(uh, uw).T.astype(np.float32)           # (H*W, Hout*Wout)
    return uh, uw, ut


def outconv_kernel(x_ref, w_ref, b_ref, ut_ref, o_ref):
    # x_ref : (N*Cin, S)     f32  VMEM   row n*Cin+ci = x[n, ci].ravel()
    # w_ref : (Cout, Cin)    f32  SMEM   1x1 conv weight (scalar reads)
    # b_ref : (Cout,)        f32  SMEM   1x1 conv bias   (scalar reads)
    # ut_ref: (S, 4*S)       bf16 VMEM   kron(Uh, Uw)^T fused bilinear operator
    # o_ref : (N*Cout, 4*S)  f32  VMEM
    cout, cin = w_ref.shape
    n_cin, _ = x_ref.shape
    nb = n_cin // cin

    x = x_ref[...]                                              # (N*Cin, S)

    # ---- 1x1 conv (+ bias) on the VPU: unrolled broadcast-FMA over Cin. ----
    rows = []
    for n in range(nb):
        for co in range(cout):
            acc = w_ref[co, 0] * x[n * cin: n * cin + 1, :]
            for ci in range(1, cin):
                acc = acc + w_ref[co, ci] * x[n * cin + ci: n * cin + ci + 1, :]
            # Bilinear weights sum to 1 per output pixel, so adding the bias
            # here is identical to adding it after the upsample.
            rows.append(acc + b_ref[co])
    y = jnp.concatenate(rows, axis=0).astype(jnp.bfloat16)      # (N*Cout, S)

    # ---- fused separable bilinear x2 upsample: one bf16 MXU matmul. ----
    up = jnp.dot(y, ut_ref[...],
                 preferred_element_type=jnp.float32)            # (N*Cout, 4S) f32

    # ---- sigmoid epilogue (EUP/VPU), lane-dense store. ----
    o_ref[...] = jax.nn.sigmoid(up).astype(o_ref.dtype)


@jax.jit
def outconv_forward(x, conv_w, conv_b, ut_bf16):
    n, cin, h, wdim = x.shape
    s = h * wdim
    s_out = ut_bf16.shape[1]                   # = (2h) * (2w)
    cout = conv_w.shape[0]
    hout, wout = 2 * h, 2 * wdim

    x_flat = x.reshape(n * cin, s)             # batch folded onto the M axis

    out_flat = pl.pallas_call(
        outconv_kernel,
        out_shape=jax.ShapeDtypeStruct((n * cout, s_out), x.dtype),
        in_specs=[
            pl.BlockSpec(memory_space=pltpu.MemorySpace.VMEM),   # x_flat
            pl.BlockSpec(memory_space=pltpu.MemorySpace.SMEM),   # conv weight
            pl.BlockSpec(memory_space=pltpu.MemorySpace.SMEM),   # conv bias
            pl.BlockSpec(memory_space=pltpu.MemorySpace.VMEM),   # kron(Uh,Uw)^T
        ],
        out_specs=pl.BlockSpec(memory_space=pltpu.MemorySpace.VMEM),
    )(x_flat, conv_w, conv_b, ut_bf16)

    return out_flat.reshape(n, cout, hout, wout)


def reference_forward(x, uh, uw, w, b):
    """Plain-JAX reference in the original PyTorch order: conv1x1(upsample(x))."""
    hi = jax.lax.Precision.HIGHEST
    up = jnp.einsum('ph,nchw->ncpw', uh, x, precision=hi)
    up = jnp.einsum('qw,ncpw->ncpq', uw, up, precision=hi)
    out = jnp.einsum('oc,ncpq->nopq', w, up, precision=hi)
    out = out + b[None, :, None, None]
    return jax.nn.sigmoid(out)


if __name__ == "__main__":
    # Small shapes consistent with OutConv: NCHW input.
    N, CIN, COUT, H, W = 2, 4, 2, 16, 16
    HOUT, WOUT = 2 * H, 2 * W

    key = jax.random.PRNGKey(0)
    kx, kw, kb = jax.random.split(key, 3)

    x = jax.random.normal(kx, (N, CIN, H, W), dtype=jnp.float32)

    # Deterministic Conv2d(kernel_size=1) params (PyTorch-style uniform init).
    fan_in = CIN * 1 * 1
    bound = 1.0 / np.sqrt(fan_in)
    conv_w = jax.random.uniform(kw, (COUT, CIN), jnp.float32, -bound, bound)
    conv_b = jax.random.uniform(kb, (COUT,), jnp.float32, -bound, bound)

    # Bilinear upsample (scale_factor=2, align_corners=True) operators.
    uh_np, uw_np, ut_np = make_fused_upsample_matrix(H, W, HOUT, WOUT)
    ut_bf16 = jnp.asarray(ut_np, dtype=jnp.bfloat16)   # (256, 1024), 512 KiB

    out = jax.block_until_ready(outconv_forward(x, conv_w, conv_b, ut_bf16))

    ref = jax.block_until_ready(
        reference_forward(x, jnp.asarray(uh_np), jnp.asarray(uw_np),
                          conv_w, conv_b))
    # bf16 MXU operands vs. a Precision.HIGHEST f32 reference: ~1e-3 absolute
    # error on the sigmoid output is expected, so use a matching tolerance
    # (per the review's correctness note on bf16 Ut).
    np.testing.assert_allclose(np.asarray(out), np.asarray(ref),
                               atol=5e-3, rtol=5e-3)

    print("KERNEL_OK")
</pallas_src>

<mosaic_0001>
module attributes {stable_mosaic.version = 11 : i64} {
  func.func @outconv_kernel(%arg0: memref<8x256xf32, #tpu.memory_space<vmem>>, %arg1: memref<2x4xf32, #tpu.memory_space<smem>>, %arg2: memref<2xf32, #tpu.memory_space<smem>>, %arg3: memref<256x1024xbf16, #tpu.memory_space<vmem>>, %arg4: memref<4x1024xf32, #tpu.memory_space<vmem>>) attributes {dimension_semantics = [], scalar_prefetch = 0 : i64, scratch_operands = 0 : i64, tpu.core_type = #tpu.core_type<tc>} {
    %c0 = arith.constant 0 : index
    %c0_0 = arith.constant 0 : index
    %0 = vector.load %arg0[%c0, %c0_0] : memref<8x256xf32, #tpu.memory_space<vmem>>, vector<8x256xf32>
    %c0_1 = arith.constant 0 : index
    %c0_2 = arith.constant 0 : index
    %1 = memref.load %arg1[%c0_1, %c0_2] : memref<2x4xf32, #tpu.memory_space<smem>>
    %2 = vector.extract_strided_slice %0 {offsets = [0, 0], sizes = [1, 256], strides = [1, 1]} : vector<8x256xf32> to vector<1x256xf32>
    %3 = vector.broadcast %1 : f32 to vector<1x256xf32>
    %4 = arith.mulf %3, %2 : vector<1x256xf32>
    %c0_3 = arith.constant 0 : index
    %c1 = arith.constant 1 : index
    %5 = memref.load %arg1[%c0_3, %c1] : memref<2x4xf32, #tpu.memory_space<smem>>
    %6 = vector.extract_strided_slice %0 {offsets = [1, 0], sizes = [1, 256], strides = [1, 1]} : vector<8x256xf32> to vector<1x256xf32>
    %7 = vector.broadcast %5 : f32 to vector<1x256xf32>
    %8 = arith.mulf %7, %6 : vector<1x256xf32>
    %9 = arith.addf %4, %8 : vector<1x256xf32>
    %c0_4 = arith.constant 0 : index
    %c2 = arith.constant 2 : index
    %10 = memref.load %arg1[%c0_4, %c2] : memref<2x4xf32, #tpu.memory_space<smem>>
    %11 = vector.extract_strided_slice %0 {offsets = [2, 0], sizes = [1, 256], strides = [1, 1]} : vector<8x256xf32> to vector<1x256xf32>
    %12 = vector.broadcast %10 : f32 to vector<1x256xf32>
    %13 = arith.mulf %12, %11 : vector<1x256xf32>
    %14 = arith.addf %9, %13 : vector<1x256xf32>
    %c0_5 = arith.constant 0 : index
    %c3 = arith.constant 3 : index
    %15 = memref.load %arg1[%c0_5, %c3] : memref<2x4xf32, #tpu.memory_space<smem>>
    %16 = vector.extract_strided_slice %0 {offsets = [3, 0], sizes = [1, 256], strides = [1, 1]} : vector<8x256xf32> to vector<1x256xf32>
    %17 = vector.broadcast %15 : f32 to vector<1x256xf32>
    %18 = arith.mulf %17, %16 : vector<1x256xf32>
    %19 = arith.addf %14, %18 : vector<1x256xf32>
    %c0_6 = arith.constant 0 : index
    %20 = memref.load %arg2[%c0_6] : memref<2xf32, #tpu.memory_space<smem>>
    %21 = vector.broadcast %20 : f32 to vector<1x256xf32>
    %22 = arith.addf %19, %21 : vector<1x256xf32>
    %c1_7 = arith.constant 1 : index
    %c0_8 = arith.constant 0 : index
    %23 = memref.load %arg1[%c1_7, %c0_8] : memref<2x4xf32, #tpu.memory_space<smem>>
    %24 = vector.extract_strided_slice %0 {offsets = [0, 0], sizes = [1, 256], strides = [1, 1]} : vector<8x256xf32> to vector<1x256xf32>
    %25 = vector.broadcast %23 : f32 to vector<1x256xf32>
    %26 = arith.mulf %25, %24 : vector<1x256xf32>
    %c1_9 = arith.constant 1 : index
    %c1_10 = arith.constant 1 : index
    %27 = memref.load %arg1[%c1_9, %c1_10] : memref<2x4xf32, #tpu.memory_space<smem>>
    %28 = vector.extract_strided_slice %0 {offsets = [1, 0], sizes = [1, 256], strides = [1, 1]} : vector<8x256xf32> to vector<1x256xf32>
    %29 = vector.broadcast %27 : f32 to vector<1x256xf32>
    %30 = arith.mulf %29, %28 : vector<1x256xf32>
    %31 = arith.addf %26, %30 : vector<1x256xf32>
    %c1_11 = arith.constant 1 : index
    %c2_12 = arith.constant 2 : index
    %32 = memref.load %arg1[%c1_11, %c2_12] : memref<2x4xf32, #tpu.memory_space<smem>>
    %33 = vector.extract_strided_slice %0 {offsets = [2, 0], sizes = [1, 256], strides = [1, 1]} : vector<8x256xf32> to vector<1x256xf32>
    %34 = vector.broadcast %32 : f32 to vector<1x256xf32>
    %35 = arith.mulf %34, %33 : vector<1x256xf32>
    %36 = arith.addf %31, %35 : vector<1x256xf32>
    %c1_13 = arith.constant 1 : index
    %c3_14 = arith.constant 3 : index
    %37 = memref.load %arg1[%c1_13, %c3_14] : memref<2x4xf32, #tpu.memory_space<smem>>
    %38 = vector.extract_strided_slice %0 {offsets = [3, 0], sizes = [1, 256], strides = [1, 1]} : vector<8x256xf32> to vector<1x256xf32>
    %39 = vector.broadcast %37 : f32 to vector<1x256xf32>
    %40 = arith.mulf %39, %38 : vector<1x256xf32>
    %41 = arith.addf %36, %40 : vector<1x256xf32>
    %c1_15 = arith.constant 1 : index
    %42 = memref.load %arg2[%c1_15] : memref<2xf32, #tpu.memory_space<smem>>
    %43 = vector.broadcast %42 : f32 to vector<1x256xf32>
    %44 = arith.addf %41, %43 : vector<1x256xf32>
    %c0_16 = arith.constant 0 : index
    %c0_17 = arith.constant 0 : index
    %45 = memref.load %arg1[%c0_16, %c0_17] : memref<2x4xf32, #tpu.memory_space<smem>>
    %46 = vector.extract_strided_slice %0 {offsets = [4, 0], sizes = [1, 256], strides = [1, 1]} : vector<8x256xf32> to vector<1x256xf32>
    %47 = vector.broadcast %45 : f32 to vector<1x256xf32>
    %48 = arith.mulf %47, %46 : vector<1x256xf32>
    %c0_18 = arith.constant 0 : index
    %c1_19 = arith.constant 1 : index
    %49 = memref.load %arg1[%c0_18, %c1_19] : memref<2x4xf32, #tpu.memory_space<smem>>
    %50 = vector.extract_strided_slice %0 {offsets = [5, 0], sizes = [1, 256], strides = [1, 1]} : vector<8x256xf32> to vector<1x256xf32>
    %51 = vector.broadcast %49 : f32 to vector<1x256xf32>
    %52 = arith.mulf %51, %50 : vector<1x256xf32>
    %53 = arith.addf %48, %52 : vector<1x256xf32>
    %c0_20 = arith.constant 0 : index
    %c2_21 = arith.constant 2 : index
    %54 = memref.load %arg1[%c0_20, %c2_21] : memref<2x4xf32, #tpu.memory_space<smem>>
    %55 = vector.extract_strided_slice %0 {offsets = [6, 0], sizes = [1, 256], strides = [1, 1]} : vector<8x256xf32> to vector<1x256xf32>
    %56 = vector.broadcast %54 : f32 to vector<1x256xf32>
    %57 = arith.mulf %56, %55 : vector<1x256xf32>
    %58 = arith.addf %53, %57 : vector<1x256xf32>
    %c0_22 = arith.constant 0 : index
    %c3_23 = arith.constant 3 : index
    %59 = memref.load %arg1[%c0_22, %c3_23] : memref<2x4xf32, #tpu.memory_space<smem>>
    %60 = vector.extract_strided_slice %0 {offsets = [7, 0], sizes = [1, 256], strides = [1, 1]} : vector<8x256xf32> to vector<1x256xf32>
    %61 = vector.broadcast %59 : f32 to vector<1x256xf32>
    %62 = arith.mulf %61, %60 : vector<1x256xf32>
    %63 = arith.addf %58, %62 : vector<1x256xf32>
    %c0_24 = arith.constant 0 : index
    %64 = memref.load %arg2[%c0_24] : memref<2xf32, #tpu.memory_space<smem>>
    %65 = vector.broadcast %64 : f32 to vector<1x256xf32>
    %66 = arith.addf %63, %65 : vector<1x256xf32>
    %c1_25 = arith.constant 1 : index
    %c0_26 = arith.constant 0 : index
    %67 = memref.load %arg1[%c1_25, %c0_26] : memref<2x4xf32, #tpu.memory_space<smem>>
    %68 = vector.extract_strided_slice %0 {offsets = [4, 0], sizes = [1, 256], strides = [1, 1]} : vector<8x256xf32> to vector<1x256xf32>
    %69 = vector.broadcast %67 : f32 to vector<1x256xf32>
    %70 = arith.mulf %69, %68 : vector<1x256xf32>
    %c1_27 = arith.constant 1 : index
    %c1_28 = arith.constant 1 : index
    %71 = memref.load %arg1[%c1_27, %c1_28] : memref<2x4xf32, #tpu.memory_space<smem>>
    %72 = vector.extract_strided_slice %0 {offsets = [5, 0], sizes = [1, 256], strides = [1, 1]} : vector<8x256xf32> to vector<1x256xf32>
    %73 = vector.broadcast %71 : f32 to vector<1x256xf32>
    %74 = arith.mulf %73, %72 : vector<1x256xf32>
    %75 = arith.addf %70, %74 : vector<1x256xf32>
    %c1_29 = arith.constant 1 : index
    %c2_30 = arith.constant 2 : index
    %76 = memref.load %arg1[%c1_29, %c2_30] : memref<2x4xf32, #tpu.memory_space<smem>>
    %77 = vector.extract_strided_slice %0 {offsets = [6, 0], sizes = [1, 256], strides = [1, 1]} : vector<8x256xf32> to vector<1x256xf32>
    %78 = vector.broadcast %76 : f32 to vector<1x256xf32>
    %79 = arith.mulf %78, %77 : vector<1x256xf32>
    %80 = arith.addf %75, %79 : vector<1x256xf32>
    %c1_31 = arith.constant 1 : index
    %c3_32 = arith.constant 3 : index
    %81 = memref.load %arg1[%c1_31, %c3_32] : memref<2x4xf32, #tpu.memory_space<smem>>
    %82 = vector.extract_strided_slice %0 {offsets = [7, 0], sizes = [1, 256], strides = [1, 1]} : vector<8x256xf32> to vector<1x256xf32>
    %83 = vector.broadcast %81 : f32 to vector<1x256xf32>
    %84 = arith.mulf %83, %82 : vector<1x256xf32>
    %85 = arith.addf %80, %84 : vector<1x256xf32>
    %c1_33 = arith.constant 1 : index
    %86 = memref.load %arg2[%c1_33] : memref<2xf32, #tpu.memory_space<smem>>
    %87 = vector.broadcast %86 : f32 to vector<1x256xf32>
    %88 = arith.addf %85, %87 : vector<1x256xf32>
    %89 = tpu.concatenate %22, %44, %66, %88 in 0 : vector<1x256xf32>, vector<1x256xf32>, vector<1x256xf32>, vector<1x256xf32> -> vector<4x256xf32>
    %90 = arith.truncf %89 : vector<4x256xf32> to vector<4x256xbf16>
    %c0_34 = arith.constant 0 : index
    %c0_35 = arith.constant 0 : index
    %91 = vector.load %arg3[%c0_34, %c0_35] : memref<256x1024xbf16, #tpu.memory_space<vmem>>, vector<256x1024xbf16>
    %cst = arith.constant dense<0.000000e+00> : vector<4x1024xf32>
    %92 = tpu.matmul %90, %91, %cst {dimension_numbers = #tpu.dot_dimension_numbers<[1], [0], [0], [1], [0, 0, 1, 1], [], []>} : vector<4x256xbf16>, vector<256x1024xbf16>, vector<4x1024xf32> -> vector<4x1024xf32>
    %93 = arith.negf %92 : vector<4x1024xf32>
    %94 = math.exp %93 : vector<4x1024xf32>
    %cst_36 = arith.constant 1.000000e+00 : f32
    %95 = vector.broadcast %cst_36 : f32 to vector<4x1024xf32>
    %96 = arith.addf %95, %94 : vector<4x1024xf32>
    %97 = arith.divf %95, %96 : vector<4x1024xf32>
    %c0_37 = arith.constant 0 : index
    %c0_38 = arith.constant 0 : index
    %98 = vector.load %arg4[%c0_37, %c0_38] : memref<4x1024xf32, #tpu.memory_space<vmem>>, vector<4x1024xf32>
    tpu.vector_store %arg4[%c0_37, %c0_38], %97 {strides = array<i32>} : memref<4x1024xf32, #tpu.memory_space<vmem>>, vector<4x1024xf32>,
    return
  }
}

</mosaic_0001>

<bundles_post_ra>
// kernel: outconv_forward.1
= control target key start
LH: loop header
LB: loop body
LE: loop exit
PB: predicated region body
PF: predicated region fallthrough
CT: control target
= control target key end

     0   :  { %9 = vsyncpa [#allocation4], 0  ;;  %s1573_s0 = inlined_call_operand.vmem [shape: f32[8,256], index: 0, kind: input, shape index: {}]   ;;  %s1574_s1 = inlined_call_operand.vmem [shape: f32[2,4], index: 1, kind: input, shape index: {}]   ;;  %s1575_s2 = inlined_call_operand.vmem [shape: f32[2], index: 2, kind: input, shape index: {}]   ;;  %s1576_s3 = inlined_call_operand.hbm [shape: bf16[256,1024], index: 3, kind: input, shape index: {}]   ;;  %s1577_s4 = inlined_call_operand.vmem [shape: f32[4,1024], index: 4, kind: output, shape index: {}]  }
   0x1   :  { %10 = vsyncpa [#allocation6], 0  ;;  %s20_s17 = sshll.u32 %s1574_s1, 4  ;;  %s21_s17 = int_to_ptr.vmem [resolvable:$true] %s20_s17 }
   0x2   :  { %11 = vsyncpa [#allocation3], 0  ;;  %s30_s20 = sshll.u32 %s1575_s2, 4  ;;  %s1361_s21 = scalar_lea.vmem %s21_s17, 32  ;;  %s31_s20 = int_to_ptr.vmem [resolvable:$true] %s30_s20 }
   0x3   :  { %p1362_p0 = scmp.ne.s32.totalorder %s21_s17, %s1361_s21  ;;  %p1366_p1 = scmp.lt.s32.totalorder %s21_s17, %s21_s17 }
   0x4   :  { %p1367_p2 = scmp.lt.s32.totalorder %s1361_s21, %s1361_s21 }
   0x6   :  { %p1368_p3 = por %p1367_p2, %p1366_p1 }
   0x8   :  { %p1369_p4 = pnand %p1368_p3, %p1362_p0 }
   0xa   :  { %1372 = shalt.err (!%p1369_p4)
}
   0xb   :  { %s1413_s22 = smov [#allocation2]   ;;  %s1373_s23 = scalar_lea.vmem %s31_s20, 16 }
   0xc   :  { %23 = dma.vmem_to_smem %s21_s17, 32, %s1413_s22, [#allocation4]  }
   0xd   :  { %p1374_p5 = scmp.ne.s32.totalorder %s31_s20, %s1373_s23  ;;  %p1378_p6 = scmp.lt.s32.totalorder %s31_s20, %s31_s20 }
   0xe   :  { %p1379_p7 = scmp.lt.s32.totalorder %s1373_s23, %s1373_s23 }
  0x10   :  { %p1380_p8 = por %p1379_p7, %p1378_p6 }
  0x12   :  { %p1381_p9 = pnand %p1380_p8, %p1374_p5 }
  0x14   :  { %1384 = shalt.err (!%p1381_p9)
}
  0x15   :  { %s1414_s1 = smov [#allocation5]   ;;  %s1415_s2 = smov [#allocation7]  }
  0x16   :  { %33 = dma.vmem_to_smem %s31_s20, 16, %s1414_s1, [#allocation6]  }
  0x17   :  { %s39_s24 = sshll.u32 %s1415_s2, 4  ;;  %s1385_s27 = scalar_lea.hbm %s1576_s3, 16384  ;;  %s40_s24 = int_to_ptr.vmem [resolvable:$true] %s39_s24 }
  0x18   :  { %p1386_p10 = scmp.ne.s32.totalorder %s1576_s3, %s1385_s27  ;;  %p1389_p11 = scmp.lt.u32.totalorder %s1385_s27, %s1576_s3 }
  0x1a   :  { %p1391_p12 = pnand %p1389_p11, %p1386_p10 }
  0x1c   :  { %1394 = shalt.err (!%p1391_p12)
}
  0x1d   :  { %s1395_s6 = scalar_lea.vmem %s40_s24, 16384  ;;  %p1400_p0 = scmp.lt.s32.totalorder %s40_s24, %s40_s24 }
  0x1e   :  { %p1396_p13 = scmp.ne.s32.totalorder %s40_s24, %s1395_s6  ;;  %p1401_p1 = scmp.lt.s32.totalorder %s1395_s6, %s1395_s6 }
  0x20   :  { %p1402_p2 = por %p1401_p1, %p1400_p0 }
  0x22   :  { %p1403_p3 = pnand %p1402_p2, %p1396_p13 }
  0x24   :  { %1406 = shalt.err (!%p1403_p3)
}
  0x25   :  { %s1416_s7 = smov 512   ;;  %s1417_s8 = smov 32  }
  0x26   :  { %45 = dma.hbm_to_vmem [thread:$0]  %s1576_s3, 16384, %s40_s24, [#allocation3], %s1416_s7, %s1416_s7, %s1417_s8  }
  0x27   :  { %1407 = dma.done.wait [#allocation4], 32  }
  0x28   :  { %1408 = vsyncadd [#allocation4], 4294967264 }
  0x29   :  { %1409 = dma.done.wait [#allocation6], 16  }
  0x2a   :  { %1410 = vsyncadd [#allocation6], 4294967280 }
  0x2b   :  { %1411 = dma.done.wait [#allocation3], 16384  }
  0x2c   :  { %1412 = vsyncadd [#allocation3], 4294950912 }
  0x2d   :  { %55 = sfence }
  0x2e   :  { %v173_v0 = vld [vmem:[#allocation7] sm:$0xff]  ;;  %v174_v2 = vld [vmem:[#allocation7 + $0x8] sm:$0xff]  ;;  %s1461_s3 = sld [smem:[#allocation2]]  ;;  %s1463_s11 = sld [smem:[#allocation2 + $0x1]]  ;;  %vm162_vm0 = vcmask 1040384   ;;  %vm165_vm1 = vcmask 1041408  }
  0x2f   :  { %v177_v1 = vld [vmem:[#allocation7 + $0x20] sm:$0xff]  ;;  %v178_v4 = vld [vmem:[#allocation7 + $0x28] sm:$0xff]  ;;  %s1465_s12 = sld [smem:[#allocation2 + $0x2]]  ;;  %s1467_s13 = sld [smem:[#allocation2 + $0x3]]  ;;  %vm168_vm2 = vcmask 1042432  }
  0x30   :  { %v1189_v3 = vcombine.high %v173_v0, %v177_v1  ;;  %v1188_v5 = vcombine.low %v173_v0, %v177_v1  ;;  %v181_v6 = vld [vmem:[#allocation7 + $0x40] sm:$0xff]  ;;  %v1191_v8 = vcombine.high %v174_v2, %v178_v4  ;;  %v1190_v9 = vcombine.low %v174_v2, %v178_v4  ;;  %v182_v11 = vld [vmem:[#allocation7 + $0x48] sm:$0xff]  ;;  %s1469_s14 = sld [smem:[#allocation2 + $0x80]]  ;;  %s1471_s15 = sld [smem:[#allocation2 + $0x81]] }
  0x31   :  { %v185_v7 = vld [vmem:[#allocation7 + $0x60] sm:$0xff]  ;;  %v186_v12 = vld [vmem:[#allocation7 + $0x68] sm:$0xff]  ;;  %s1473_s16 = sld [smem:[#allocation2 + $0x82]]  ;;  %s1475_s17 = sld [smem:[#allocation2 + $0x83]] }
  0x32   :  { %v1197_v10 = vcombine.high %v181_v6, %v185_v7  ;;  %v189_v13 = vld [vmem:[#allocation7 + $0x80] sm:$0xff]  ;;  %941 = vmatprep.subr.bf16.mxu0 %v1189_v3  ;;  %v1199_v14 = vcombine.high %v182_v11, %v186_v12  ;;  %v190_v16 = vld [vmem:[#allocation7 + $0x88] sm:$0xff]  ;;  %982 = vmatprep.subr.bf16.mxu1 %v1191_v8  ;;  %v1196_v18 = vcombine.low %v181_v6, %v185_v7  ;;  %s1481_s18 = sld [smem:[#allocation5]]  ;;  %s1490_s21 = sld [smem:[#allocation5 + $0x1]] }
  0x33   :  { %v193_v15 = vld [vmem:[#allocation7 + $0xa0] sm:$0xff]  ;;  %v194_v17 = vld [vmem:[#allocation7 + $0xa8] sm:$0xff]  ;;  %942 = vmatpush1.bf16.msra.mxu0 %v1188_v5  ;;  %983 = vmatpush1.bf16.msra.mxu1 %v1190_v9  ;;  %v1198_v19 = vcombine.low %v182_v11, %v186_v12 }
  0x34   :  { %943 = vmatprep.subr.bf16.mxu0 %v1197_v10  ;;  %v1205_v20 = vcombine.high %v189_v13, %v193_v15  ;;  %984 = vmatprep.subr.bf16.mxu1 %v1199_v14  ;;  %v1207_v21 = vcombine.high %v190_v16, %v194_v17  ;;  %v197_v22 = vld [vmem:[#allocation7 + $0xc0] sm:$0xff]  ;;  %v198_v24 = vld [vmem:[#allocation7 + $0xc8] sm:$0xff]  ;;  %v1204_v26 = vcombine.low %v189_v13, %v193_v15  ;;  %v59_v51 = vstv %s1461_s3 }
  0x35   :  { %v201_v23 = vld [vmem:[#allocation7 + $0xe0] sm:$0xff]  ;;  %v202_v25 = vld [vmem:[#allocation7 + $0xe8] sm:$0xff]  ;;  %v1206_v27 = vcombine.low %v190_v16, %v194_v17  ;;  %v63_v52 = vstv %s1463_s11  ;;  %v75_v53 = vstv %s1465_s12  ;;  %v87_v54 = vstv %s1467_s13 }
  0x36   :  { %v1213_v28 = vcombine.high %v197_v22, %v201_v23  ;;  %v1215_v29 = vcombine.high %v198_v24, %v202_v25  ;;  %v205_v30 = vld [vmem:[#allocation7 + $0x100] sm:$0xff]  ;;  %v206_v32 = vld [vmem:[#allocation7 + $0x108] sm:$0xff]  ;;  %v1212_v34 = vcombine.low %v197_v22, %v201_v23  ;;  %v1214_v35 = vcombine.low %v198_v24, %v202_v25 }
  0x37   :  { %944 = vmatpush1.bf16.msra.mxu0 %v1196_v18  ;;  %985 = vmatpush1.bf16.msra.mxu1 %v1198_v19  ;;  %v209_v31 = vld [vmem:[#allocation7 + $0x120] sm:$0xff]  ;;  %v210_v33 = vld [vmem:[#allocation7 + $0x128] sm:$0xff]  ;;  %v103_v55 = vstv %s1469_s14  ;;  %v107_v56 = vstv %s1471_s15  ;;  %v119_v60 = vstv %s1473_s16  ;;  %v131_v61 = vstv %s1475_s17 }
  0x38   :  { %945 = vmatprep.subr.bf16.mxu0 %v1205_v20  ;;  %986 = vmatprep.subr.bf16.mxu1 %v1207_v21  ;;  %v1221_v36 = vcombine.high %v205_v30, %v209_v31  ;;  %v1223_v37 = vcombine.high %v206_v32, %v210_v33  ;;  %v213_v38 = vld [vmem:[#allocation7 + $0x140] sm:$0xff]  ;;  %v214_v40 = vld [vmem:[#allocation7 + $0x148] sm:$0xff]  ;;  %v1220_v42 = vcombine.low %v205_v30, %v209_v31 }
  0x39   :  { %v217_v39 = vld [vmem:[#allocation7 + $0x160] sm:$0xff]  ;;  %v218_v41 = vld [vmem:[#allocation7 + $0x168] sm:$0xff]  ;;  %v1222_v43 = vcombine.low %v206_v32, %v210_v33  ;;  %v99_v33 = vstv %s1481_s18 }
  0x3a   :  { %v1229_v44 = vcombine.high %v213_v38, %v217_v39  ;;  %v1231_v45 = vcombine.high %v214_v40, %v218_v41  ;;  %v221_v46 = vld [vmem:[#allocation7 + $0x180] sm:$0xff]  ;;  %v1228_v48 = vcombine.low %v213_v38, %v217_v39  ;;  %v222_v49 = vld [vmem:[#allocation7 + $0x188] sm:$0xff]  ;;  %v1230_v57 = vcombine.low %v214_v40, %v218_v41 }
  0x3b   :  { %946 = vmatpush1.bf16.msra.mxu0 %v1204_v26  ;;  %987 = vmatpush1.bf16.msra.mxu1 %v1206_v27  ;;  %v225_v47 = vld [vmem:[#allocation7 + $0x1a0] sm:$0xff]  ;;  %v226_v50 = vld [vmem:[#allocation7 + $0x1a8] sm:$0xff]  ;;  %v143_v40 = vstv %s1490_s21 }
  0x3c   :  { %947 = vmatprep.subr.bf16.mxu0 %v1213_v28  ;;  %988 = vmatprep.subr.bf16.mxu1 %v1215_v29  ;;  %v1237_v58 = vcombine.high %v221_v46, %v225_v47  ;;  %v57_v59 = vld [vmem:[%s1573_s0 + $0x8] sm:$0xff]  ;;  %v1239_v62 = vcombine.high %v222_v49, %v226_v50  ;;  %v229_v63 = vld [vmem:[#allocation7 + $0x1c0] sm:$0xff]  ;;  %v1236_v9 = vcombine.low %v221_v46, %v225_v47 }
  0x3d   :  { %v233_v0 = vld [vmem:[#allocation7 + $0x1e0] sm:$0xff]  ;;  %v61_v1 = vmul.f32 %v59_v51, %v57_v59  ;;  %v65_v2 = vmul.f32 %v63_v52, %v57_v59  ;;  %v230_v3 = vld [vmem:[#allocation7 + $0x1c8] sm:$0xff]  ;;  %v77_v5 = vmul.f32 %v75_v53, %v57_v59  ;;  %v89_v6 = vmul.f32 %v87_v54, %v57_v59 }
  0x3e   :  { %v234_v4 = vld [vmem:[#allocation7 + $0x1e8] sm:$0xff]  ;;  %v105_v7 = vmul.f32 %v103_v55, %v57_v59  ;;  %v109_v8 = vmul.f32 %v107_v56, %v57_v59  ;;  %v121_v11 = vmul.f32 %v119_v60, %v57_v59  ;;  %v133_v12 = vmul.f32 %v131_v61, %v57_v59  ;;  %v237_v15 = vld [vmem:[#allocation7 + $0x200] sm:$0xff] }
  0x3f   :  { %948 = vmatpush1.bf16.msra.mxu0 %v1212_v34  ;;  %989 = vmatpush1.bf16.msra.mxu1 %v1214_v35  ;;  %v69_v10 = vrot.slane %v65_v2, 1  ;;  %v1238_v13 = vcombine.low %v222_v49, %v226_v50  ;;  %v1245_v14 = vcombine.high %v229_v63, %v233_v0  ;;  %v241_v16 = vld [vmem:[#allocation7 + $0x220] sm:$0xff]  ;;  %v81_v17 = vrot.slane %v77_v5, 2  ;;  %v238_v21 = vld [vmem:[#allocation7 + $0x208] sm:$0xff] }
  0x40   :  { %949 = vmatprep.subr.bf16.mxu0 %v1221_v36  ;;  %990 = vmatprep.subr.bf16.mxu1 %v1223_v37  ;;  %v113_v18 = vrot.slane %v109_v8, 1  ;;  %v1507_v19 = vld [vmem:[%s1573_s0] sm:$0xff]  ;;  %v1247_v20 = vcombine.high %v230_v3, %v234_v4  ;;  %v242_v22 = vld [vmem:[#allocation7 + $0x228] sm:$0xff]  ;;  %v93_v24 = vrot.slane %v89_v6, 3  ;;  %v125_v25 = vrot.slane %v121_v11, 2 }
  0x41   :  { %v73_v23 = vadd.f32 %v69_v10, %v61_v1  ;;  %v1244_v26 = vcombine.low %v229_v63, %v233_v0  ;;  %v1246_v27 = vcombine.low %v230_v3, %v234_v4  ;;  %v137_v29 = vrot.slane %v133_v12, 3  ;;  %v1509_v31 = vld [vmem:[#allocation7 + $0x240] sm:$0xff]  ;;  %v246_v37 = vld [vmem:[#allocation7 + $0x248] sm:$0xff] }
  0x42   :  { %v117_v28 = vadd.f32 %v113_v18, %v105_v7  ;;  %v1253_v30 = vcombine.high %v237_v15, %v241_v16  ;;  %v108_v34 = vmul.f32 %v107_v56, %v1507_v19  ;;  %v1255_v35 = vcombine.high %v238_v21, %v242_v22  ;;  %v249_v36 = vld [vmem:[#allocation7 + $0x260] sm:$0xff]  ;;  %v250_v38 = vld [vmem:[#allocation7 + $0x268] sm:$0xff] }
  0x43   :  { %950 = vmatpush1.bf16.msra.mxu0 %v1220_v42  ;;  %991 = vmatpush1.bf16.msra.mxu1 %v1222_v43  ;;  %v85_v32 = vadd.f32 %v81_v17, %v73_v23  ;;  %v64_v41 = vmul.f32 %v63_v52, %v1507_v19  ;;  %v104_v43 = vmul.f32 %v103_v55, %v1507_v19  ;;  %v253_v56 = vld [vmem:[#allocation7 + $0x280] sm:$0xff]  ;;  %v254_v2 = vld [vmem:[#allocation7 + $0x288] sm:$0xff] }
  0x44   :  { %951 = vmatprep.subr.bf16.mxu0 %v1229_v44  ;;  %992 = vmatprep.subr.bf16.mxu1 %v1231_v45  ;;  %v129_v39 = vadd.f32 %v125_v25, %v117_v28  ;;  %v112_v44 = vrot.slane %v108_v34, 1  ;;  %v120_v45 = vmul.f32 %v119_v60, %v1507_v19  ;;  %v1252_v46 = vcombine.low %v237_v15, %v241_v16  ;;  %v257_v55 = vld [vmem:[#allocation7 + $0x2a0] sm:$0xff]  ;;  %v258_v3 = vld [vmem:[#allocation7 + $0x2a8] sm:$0xff] }
  0x45   :  { %v97_v42 = vadd.f32 %v93_v24, %v85_v32  ;;  %v1261_v49 = vcombine.high %v1509_v31, %v249_v36  ;;  %v1263_v50 = vcombine.high %v246_v37, %v250_v38  ;;  %v68_v59 = vrot.slane %v64_v41, 1  ;;  %v261_v11 = vld [vmem:[#allocation7 + $0x2c0] sm:$0xff]  ;;  %v262_v16 = vld [vmem:[#allocation7 + $0x2c8] sm:$0xff] }
  0x46   :  { %v141_v47 = vadd.f32 %v137_v29, %v129_v39  ;;  %v76_v60 = vmul.f32 %v75_v53, %v1507_v19  ;;  %v116_v63 = vadd.f32 %v112_v44, %v104_v43  ;;  %v124_v0 = vrot.slane %v120_v45, 2  ;;  %v265_v12 = vld [vmem:[#allocation7 + $0x2e0] sm:$0xff]  ;;  %v266_v17 = vld [vmem:[#allocation7 + $0x2e8] sm:$0xff] }
  0x47   :  { %952 = vmatpush1.bf16.msra.mxu0 %v1228_v48  ;;  %993 = vmatpush1.bf16.msra.mxu1 %v1230_v57  ;;  %v1254_v48 = vcombine.low %v238_v21, %v242_v22  ;;  %v101_v52 = vadd.f32 %v99_v33, %v97_v42  ;;  %v132_v1 = vmul.f32 %v131_v61, %v1507_v19  ;;  %v269_v25 = vld [vmem:[#allocation7 + $0x300] sm:$0xff]  ;;  %v270_v28 = vld [vmem:[#allocation7 + $0x308] sm:$0xff] }
  0x48   :  { %953 = vmatprep.subr.bf16.mxu0 %v1237_v58  ;;  %994 = vmatprep.subr.bf16.mxu1 %v1239_v62  ;;  %v145_v57 = vadd.f32 %v143_v40, %v141_v47  ;;  %v60_v58 = vmul.f32 %v59_v51, %v1507_v19  ;;  %v1260_v51 = vcombine.low %v1509_v31, %v249_v36  ;;  %v274_v29 = vld [vmem:[#allocation7 + $0x328] sm:$0xff]  ;;  %v277_v36 = vld [vmem:[#allocation7 + $0x340] sm:$0xff] }
  0x49   :  { %v155_v62 = vrot.slane %v101_v52, 2  ;;  %v1262_v6 = vcombine.low %v246_v37, %v250_v38  ;;  %v1269_v7 = vcombine.high %v253_v56, %v257_v55  ;;  %v88_v61 = vmul.f32 %v87_v54, %v1507_v19  ;;  %v281_v37 = vld [vmem:[#allocation7 + $0x360] sm:$0xff]  ;;  %v278_v39 = vld [vmem:[#allocation7 + $0x348] sm:$0xff] }
  0x4a   :  { %v149_v4 = vrot.slane %v145_v57, 7  ;;  %v159_v5 = vrot.slane %v145_v57, 1  ;;  %v72_v8 = vadd.f32 %v68_v59, %v60_v58  ;;  %v1271_v10 = vcombine.high %v254_v2, %v258_v3  ;;  %v282_v41 = vld [vmem:[#allocation7 + $0x368] sm:$0xff]  ;;  %v285_v47 = vld [vmem:[#allocation7 + $0x380] sm:$0xff] }
  0x4b   :  { %954 = vmatpush1.bf16.msra.mxu0 %v1236_v9  ;;  %995 = vmatpush1.bf16.msra.mxu1 %v1238_v13  ;;  %v80_v9 = vrot.slane %v76_v60, 2  ;;  %v136_v15 = vrot.slane %v132_v1, 3  ;;  %v1270_v22 = vcombine.low %v254_v2, %v258_v3  ;;  %v1277_v54 = vcombine.high %v261_v11, %v265_v12  ;;  %v293_v59 = vld [vmem:[#allocation7 + $0x3c0] sm:$0xff] }
  0x4c   :  { %955 = vmatprep.subr.bf16.mxu0 %v1245_v14  ;;  %996 = vmatprep.subr.bf16.mxu1 %v1247_v20  ;;  %v164_v53 = vsel %vm162_vm0, %v101_v52, %v149_v4  ;;  %v128_v14 = vadd.f32 %v124_v0, %v116_v63  ;;  %v1268_v20 = vcombine.low %v253_v56, %v257_v55  ;;  %v92_v23 = vrot.slane %v88_v61, 3  ;;  %v290_v52 = vld [vmem:[#allocation7 + $0x3a8] sm:$0xff]  ;;  %v297_v60 = vld [vmem:[#allocation7 + $0x3e0] sm:$0xff] }
  0x4d   :  { %v167_v13 = vsel %vm165_vm1, %v164_v53, %v155_v62  ;;  %v84_v19 = vadd.f32 %v80_v9, %v72_v8  ;;  %v1279_v24 = vcombine.high %v262_v16, %v266_v17  ;;  %v1278_v31 = vcombine.low %v262_v16, %v266_v17  ;;  %v294_v62 = vld [vmem:[#allocation7 + $0x3c8] sm:$0xff]  ;;  %v180_v53 = vld [vmem:[#allocation7 + $0x38] sm:$0xff] }
  0x4e   :  { %v170_v18 = vsel %vm168_vm2, %v167_v13, %v159_v5  ;;  %v1286_v43 = vcombine.low %v270_v28, %v274_v29  ;;  %v1293_v44 = vcombine.high %v277_v36, %v281_v37  ;;  %v1292_v56 = vcombine.low %v277_v36, %v281_v37  ;;  %v298_v63 = vld [vmem:[#allocation7 + $0x3e8] sm:$0xff]  ;;  %v187_v13 = vld [vmem:[#allocation7 + $0x70] sm:$0xff]  ;;  %v188_v16 = vld [vmem:[#allocation7 + $0x78] sm:$0xff] }
  0x4f   :  { %956 = vmatpush1.bf16.msra.mxu0 %v1244_v26  ;;  %997 = vmatpush1.bf16.msra.mxu1 %v1246_v27  ;;  %v1542_v21 = vpack.c.bf16 %v170_v18, %v170_v18  ;;  %v273_v26 = vld [vmem:[#allocation7 + $0x320] sm:$0xff]  ;;  %v140_v27 = vadd.f32 %v136_v15, %v128_v14  ;;  %v96_v34 = vadd.f32 %v92_v23, %v84_v19  ;;  %v184_v15 = vld [vmem:[#allocation7 + $0x58] sm:$0xff]  ;;  %v195_v19 = vld [vmem:[#allocation7 + $0xb0] sm:$0xff] }
  0x50   :  { %957 = vmatprep.subr.bf16.mxu0 %v1253_v30  ;;  %998 = vmatprep.subr.bf16.mxu1 %v1255_v35  ;;  %v1276_v30 = vcombine.low %v261_v11, %v265_v12  ;;  %v1285_v32 = vcombine.high %v269_v25, %v273_v26  ;;  %v1287_v35 = vcombine.high %v270_v28, %v274_v29  ;;  %v183_v12 = vld [vmem:[#allocation7 + $0x50] sm:$0xff]  ;;  %v192_v23 = vld [vmem:[#allocation7 + $0x98] sm:$0xff] }
  0x51   :  { %973 = vmatprep.mubr.bf16.mxu0 %v1542_v21  ;;  %1014 = vmatprep.mubr.bf16.mxu1 %v1542_v21  ;;  %v144_v38 = vadd.f32 %v143_v40, %v140_v27  ;;  %v1284_v42 = vcombine.low %v269_v25, %v273_v26  ;;  %v100_v45 = vadd.f32 %v99_v33, %v96_v34  ;;  %v199_v29 = vld [vmem:[#allocation7 + $0xd0] sm:$0xff] }
  0x52   :  { %v1294_v40 = vcombine.low %v278_v39, %v282_v41  ;;  %v1309_v3 = vcombine.high %v293_v59, %v297_v60  ;;  %v1311_v5 = vcombine.high %v294_v62, %v298_v63  ;;  %v1308_v8 = vcombine.low %v293_v59, %v297_v60  ;;  %v228_v59 = vld [vmem:[#allocation7 + $0x1b8] sm:$0xff] }
  0x53   :  { %958 = vmatpush1.bf16.msra.mxu0 %v1252_v46  ;;  %999 = vmatpush1.bf16.msra.mxu1 %v1254_v48  ;;  %v1295_v46 = vcombine.high %v278_v39, %v282_v41  ;;  %v289_v48 = vld [vmem:[#allocation7 + $0x3a0] sm:$0xff]  ;;  %v154_v57 = vrot.slane %v100_v45, 2  ;;  %v158_v1 = vrot.slane %v144_v38, 1  ;;  %v1310_v61 = vcombine.low %v294_v62, %v298_v63  ;;  %v211_v39 = vld [vmem:[#allocation7 + $0x130] sm:$0xff]  ;;  %v208_v41 = vld [vmem:[#allocation7 + $0x118] sm:$0xff] }
  0x54   :  { %959 = vmatprep.subr.bf16.mxu0 %v1261_v49  ;;  %1000 = vmatprep.subr.bf16.mxu1 %v1263_v50  ;;  %v148_v49 = vrot.slane %v144_v38, 7  ;;  %v286_v50 = vld [vmem:[#allocation7 + $0x388] sm:$0xff]  ;;  %v1301_v55 = vcombine.high %v285_v47, %v289_v48  ;;  %v1300_v0 = vcombine.low %v285_v47, %v289_v48  ;;  %v1200_v25 = vcombine.low %v183_v12, %v187_v13  ;;  %v207_v38 = vld [vmem:[#allocation7 + $0x110] sm:$0xff]  ;;  %v216_v48 = vld [vmem:[#allocation7 + $0x158] sm:$0xff] }
  0x55   :  { %v1303_v58 = vcombine.high %v286_v50, %v290_v52  ;;  %v1302_v2 = vcombine.low %v286_v50, %v290_v52  ;;  %v1202_v26 = vcombine.low %v184_v15, %v188_v16  ;;  %v219_v47 = vld [vmem:[#allocation7 + $0x170] sm:$0xff]  ;;  %v1224_v50 = vcombine.low %v207_v38, %v211_v39 }
  0x56   :  { %v163_v33 = vsel %vm162_vm0, %v100_v45, %v148_v49  ;;  %v1225_v45 = vcombine.high %v207_v38, %v211_v39  ;;  %v220_v49 = vld [vmem:[#allocation7 + $0x178] sm:$0xff]  ;;  %v271_v39 = vld [vmem:[#allocation7 + $0x310] sm:$0xff] }
  0x57   :  { %960 = vmatpush1.bf16.msra.mxu0 %v1260_v51  ;;  %1001 = vmatpush1.bf16.msra.mxu1 %v1262_v6  ;;  %v166_v4 = vsel %vm165_vm1, %v163_v33, %v154_v57  ;;  %v175_v51 = vld [vmem:[#allocation7 + $0x10] sm:$0xff]  ;;  %v1234_v33 = vcombine.low %v216_v48, %v220_v49 }
  0x58   :  { %961 = vmatprep.subr.bf16.mxu0 %v1269_v7  ;;  %1002 = vmatprep.subr.bf16.mxu1 %v1271_v10  ;;  %v179_v6 = vld [vmem:[#allocation7 + $0x30] sm:$0xff]  ;;  %v176_v7 = vld [vmem:[#allocation7 + $0x18] sm:$0xff]  ;;  %v169_v9 = vsel %vm168_vm2, %v166_v4, %v158_v1 }
  0x59   :  { %v1193_v10 = vcombine.high %v175_v51, %v179_v6  ;;  %v1195_v11 = vcombine.high %v176_v7, %v180_v53  ;;  %v1553_v14 = vpack.c.bf16 %v169_v9, %v169_v9  ;;  %v1192_v17 = vcombine.low %v175_v51, %v179_v6  ;;  %v227_v57 = vld [vmem:[#allocation7 + $0x1b0] sm:$0xff]  ;;  %v244_v9 = vld [vmem:[#allocation7 + $0x238] sm:$0xff] }
  0x5a   :  { %v1194_v18 = vcombine.low %v176_v7, %v180_v53  ;;  %v235_v1 = vld [vmem:[#allocation7 + $0x1f0] sm:$0xff] }
  0x5b   :  { %962 = vmatpush1.bf16.msra.mxu0 %v1268_v20  ;;  %1003 = vmatpush1.bf16.msra.mxu1 %v1270_v22  ;;  %v1201_v20 = vcombine.high %v183_v12, %v187_v13  ;;  %v1203_v22 = vcombine.high %v184_v15, %v188_v16  ;;  %v239_v7 = vld [vmem:[#allocation7 + $0x210] sm:$0xff]  ;;  %v248_v16 = vld [vmem:[#allocation7 + $0x258] sm:$0xff] }
  0x5c   :  { %963 = vmatprep.subr.bf16.mxu0 %v1277_v54  ;;  %1004 = vmatprep.subr.bf16.mxu1 %v1279_v24  ;;  %v191_v54 = vld [vmem:[#allocation7 + $0x90] sm:$0xff]  ;;  %v196_v24 = vld [vmem:[#allocation7 + $0xb8] sm:$0xff] }
  0x5d   :  { %v1209_v27 = vcombine.high %v191_v54, %v195_v19  ;;  %v1211_v28 = vcombine.high %v192_v23, %v196_v24  ;;  %v1208_v34 = vcombine.low %v191_v54, %v195_v19  ;;  %v243_v53 = vld [vmem:[#allocation7 + $0x230] sm:$0xff] }
  0x5e   :  { %v247_v13 = vld [vmem:[#allocation7 + $0x250] sm:$0xff] }
  0x5f   :  { %964 = vmatpush1.bf16.msra.mxu0 %v1276_v30  ;;  %1005 = vmatpush1.bf16.msra.mxu1 %v1278_v31  ;;  %v203_v30 = vld [vmem:[#allocation7 + $0xf0] sm:$0xff]  ;;  %v200_v31 = vld [vmem:[#allocation7 + $0xd8] sm:$0xff] }
  0x60   :  { %965 = vmatprep.subr.bf16.mxu0 %v1285_v32  ;;  %1006 = vmatprep.subr.bf16.mxu1 %v1287_v35  ;;  %v204_v32 = vld [vmem:[#allocation7 + $0xf8] sm:$0xff]  ;;  %v1210_v35 = vcombine.low %v192_v23, %v196_v24  ;;  %v1217_v36 = vcombine.high %v199_v29, %v203_v30  ;;  %v251_v15 = vld [vmem:[#allocation7 + $0x270] sm:$0xff] }
  0x61   :  { %v1219_v37 = vcombine.high %v200_v31, %v204_v32  ;;  %v255_v19 = vld [vmem:[#allocation7 + $0x290] sm:$0xff]  ;;  %v256_v24 = vld [vmem:[#allocation7 + $0x298] sm:$0xff] }
  0x62   :  { %v259_v23 = vld [vmem:[#allocation7 + $0x2b0] sm:$0xff] }
  0x63   :  { %966 = vmatpush1.bf16.msra.mxu0 %v1284_v42  ;;  %1007 = vmatpush1.bf16.msra.mxu1 %v1286_v43  ;;  %v212_v42 = vld [vmem:[#allocation7 + $0x138] sm:$0xff]  ;;  %v1216_v43 = vcombine.low %v199_v29, %v203_v30  ;;  %v263_v30 = vld [vmem:[#allocation7 + $0x2d0] sm:$0xff] }
  0x64   :  { %967 = vmatprep.subr.bf16.mxu0 %v1293_v44  ;;  %1008 = vmatprep.subr.bf16.mxu1 %v1295_v46  ;;  %v1218_v44 = vcombine.low %v200_v31, %v204_v32  ;;  %v215_v46 = vld [vmem:[#allocation7 + $0x150] sm:$0xff]  ;;  %v1226_v52 = vcombine.low %v208_v41, %v212_v42  ;;  %v264_v32 = vld [vmem:[#allocation7 + $0x2d8] sm:$0xff] }
  0x65   :  { %v1232_v60 = vcombine.low %v215_v46, %v219_v47  ;;  %v267_v31 = vld [vmem:[#allocation7 + $0x2f0] sm:$0xff] }
  0x67   :  { %968 = vmatpush1.bf16.msra.mxu0 %v1292_v56  ;;  %1009 = vmatpush1.bf16.msra.mxu1 %v1294_v40  ;;  %v1233_v56 = vcombine.high %v215_v46, %v219_v47  ;;  %v1235_v40 = vcombine.high %v216_v48, %v220_v49  ;;  %v279_v47 = vld [vmem:[#allocation7 + $0x350] sm:$0xff]  ;;  %v280_v49 = vld [vmem:[#allocation7 + $0x358] sm:$0xff] }
  0x68   :  { %969 = vmatprep.subr.bf16.mxu0 %v1301_v55  ;;  %1010 = vmatprep.subr.bf16.mxu1 %v1303_v58  ;;  %v223_v55 = vld [vmem:[#allocation7 + $0x190] sm:$0xff]  ;;  %v224_v58 = vld [vmem:[#allocation7 + $0x198] sm:$0xff] }
  0x69   :  { %v1241_v62 = vcombine.high %v223_v55, %v227_v57  ;;  %v1243_v63 = vcombine.high %v224_v58, %v228_v59  ;;  %v1240_v4 = vcombine.low %v223_v55, %v227_v57  ;;  %v283_v48 = vld [vmem:[#allocation7 + $0x370] sm:$0xff] }
  0x6a   :  { %v287_v57 = vld [vmem:[#allocation7 + $0x390] sm:$0xff] }
  0x6b   :  { %970 = vmatpush1.bf16.msra.mxu0 %v1300_v0  ;;  %1011 = vmatpush1.bf16.msra.mxu1 %v1302_v2  ;;  %v231_v0 = vld [vmem:[#allocation7 + $0x1d0] sm:$0xff]  ;;  %v232_v2 = vld [vmem:[#allocation7 + $0x1d8] sm:$0xff] }
  0x6c   :  { %971 = vmatprep.subr.bf16.mxu0 %v1309_v3  ;;  %1012 = vmatprep.subr.bf16.mxu1 %v1311_v5  ;;  %v236_v3 = vld [vmem:[#allocation7 + $0x1f8] sm:$0xff]  ;;  %v1242_v5 = vcombine.low %v224_v58, %v228_v59  ;;  %v1249_v51 = vcombine.high %v231_v0, %v235_v1  ;;  %v291_v58 = vld [vmem:[#allocation7 + $0x3b0] sm:$0xff] }
  0x6d   :  { %v1251_v6 = vcombine.high %v232_v2, %v236_v3  ;;  %v288_v59 = vld [vmem:[#allocation7 + $0x398] sm:$0xff] }
  0x6f   :  { %972 = vmatpush1.bf16.msra.mxu0 %v1308_v8  ;;  %1013 = vmatpush1.bf16.msra.mxu1 %v1310_v61  ;;  %v240_v8 = vld [vmem:[#allocation7 + $0x218] sm:$0xff]  ;;  %v1248_v61 = vcombine.low %v231_v0, %v235_v1  ;;  %v295_v1 = vld [vmem:[#allocation7 + $0x3d0] sm:$0xff] }
  0x70   :  { %1023 = vmatprep.subr.bf16.mxu0 %v1193_v10  ;;  %1064 = vmatprep.subr.bf16.mxu1 %v1195_v11  ;;  %v1250_v10 = vcombine.low %v232_v2, %v236_v3  ;;  %v1257_v11 = vcombine.high %v239_v7, %v243_v53  ;;  %v1259_v12 = vcombine.high %v240_v8, %v244_v9  ;;  %v299_v2 = vld [vmem:[#allocation7 + $0x3f0] sm:$0xff]  ;;  %v296_v3 = vld [vmem:[#allocation7 + $0x3d8] sm:$0xff] }
  0x72   :  { %974 = vmatmul.mubr.bf16.vlgmr.msra.gmra.mrb[0].mxu0 %v1553_v14  ;;  %1015 = vmatmul.mubr.bf16.vlgmr.msra.gmra.mrb[0].mxu1 %v1553_v14 }
  0x73   :  { %1024 = vmatpush1.bf16.msra.mxu0 %v1192_v17  ;;  %1065 = vmatpush1.bf16.msra.mxu1 %v1194_v18  ;;  %v252_v17 = vld [vmem:[#allocation7 + $0x278] sm:$0xff]  ;;  %v1256_v18 = vcombine.low %v239_v7, %v243_v53  ;;  %v1312_v53 = vcombine.low %v295_v1, %v299_v2 }
  0x74   :  { %1025 = vmatprep.subr.bf16.mxu0 %v1201_v20  ;;  %1066 = vmatprep.subr.bf16.mxu1 %v1203_v22  ;;  %v1258_v20 = vcombine.low %v240_v8, %v244_v9  ;;  %v1265_v22 = vcombine.high %v247_v13, %v251_v15  ;;  %v1267_v54 = vcombine.high %v248_v16, %v252_v17 }
  0x75   :  { %1055 = vmatprep.mubr.bf16.mxu0 %v1542_v21  ;;  %1096 = vmatprep.mubr.bf16.mxu1 %v1542_v21  ;;  %v1227_v21 = vcombine.high %v208_v41, %v212_v42  ;;  %v275_v41 = vld [vmem:[#allocation7 + $0x330] sm:$0xff]  ;;  %v272_v42 = vld [vmem:[#allocation7 + $0x318] sm:$0xff] }
  0x77   :  { %1026 = vmatpush1.bf16.msra.mxu0 %v1200_v25  ;;  %1067 = vmatpush1.bf16.msra.mxu1 %v1202_v26  ;;  %v260_v25 = vld [vmem:[#allocation7 + $0x2b8] sm:$0xff]  ;;  %v1264_v26 = vcombine.low %v247_v13, %v251_v15 }
  0x78   :  { %1027 = vmatprep.subr.bf16.mxu0 %v1209_v27  ;;  %1068 = vmatprep.subr.bf16.mxu1 %v1211_v28  ;;  %v1266_v27 = vcombine.low %v248_v16, %v252_v17  ;;  %v1273_v28 = vcombine.high %v255_v19, %v259_v23  ;;  %v1275_v29 = vcombine.high %v256_v24, %v260_v25 }
  0x7b   :  { %1028 = vmatpush1.bf16.msra.mxu0 %v1208_v34  ;;  %1069 = vmatpush1.bf16.msra.mxu1 %v1210_v35  ;;  %v268_v34 = vld [vmem:[#allocation7 + $0x2f8] sm:$0xff]  ;;  %v1272_v35 = vcombine.low %v255_v19, %v259_v23 }
  0x7c   :  { %1029 = vmatprep.subr.bf16.mxu0 %v1217_v36  ;;  %1070 = vmatprep.subr.bf16.mxu1 %v1219_v37  ;;  %v1274_v36 = vcombine.low %v256_v24, %v260_v25  ;;  %v1281_v37 = vcombine.high %v263_v30, %v267_v31  ;;  %v1283_v38 = vcombine.high %v264_v32, %v268_v34 }
  0x7f   :  { %1030 = vmatpush1.bf16.msra.mxu0 %v1216_v43  ;;  %1071 = vmatpush1.bf16.msra.mxu1 %v1218_v44  ;;  %v276_v43 = vld [vmem:[#allocation7 + $0x338] sm:$0xff]  ;;  %v1280_v44 = vcombine.low %v263_v30, %v267_v31 }
  0x80   :  { %1031 = vmatprep.subr.bf16.mxu0 %v1225_v45  ;;  %1072 = vmatprep.subr.bf16.mxu1 %v1227_v21  ;;  %v1282_v45 = vcombine.low %v264_v32, %v268_v34  ;;  %v1289_v21 = vcombine.high %v271_v39, %v275_v41  ;;  %v1291_v46 = vcombine.high %v272_v42, %v276_v43 }
  0x83   :  { %1032 = vmatpush1.bf16.msra.mxu0 %v1224_v50  ;;  %1073 = vmatpush1.bf16.msra.mxu1 %v1226_v52  ;;  %v284_v50 = vld [vmem:[#allocation7 + $0x378] sm:$0xff]  ;;  %v1288_v52 = vcombine.low %v271_v39, %v275_v41 }
  0x84   :  { %1033 = vmatprep.subr.bf16.mxu0 %v1233_v56  ;;  %1074 = vmatprep.subr.bf16.mxu1 %v1235_v40  ;;  %v1290_v56 = vcombine.low %v272_v42, %v276_v43  ;;  %v1297_v40 = vcombine.high %v279_v47, %v283_v48  ;;  %v1299_v55 = vcombine.high %v280_v49, %v284_v50 }
  0x87   :  { %1034 = vmatpush1.bf16.msra.mxu0 %v1232_v60  ;;  %1075 = vmatpush1.bf16.msra.mxu1 %v1234_v33  ;;  %v292_v60 = vld [vmem:[#allocation7 + $0x3b8] sm:$0xff]  ;;  %v1296_v33 = vcombine.low %v279_v47, %v283_v48 }
  0x88   :  { %1035 = vmatprep.subr.bf16.mxu0 %v1241_v62  ;;  %1076 = vmatprep.subr.bf16.mxu1 %v1243_v63  ;;  %v1298_v62 = vcombine.low %v280_v49, %v284_v50  ;;  %v1305_v63 = vcombine.high %v287_v57, %v291_v58  ;;  %v1307_v0 = vcombine.high %v288_v59, %v292_v60 }
  0x8b   :  { %1036 = vmatpush1.bf16.msra.mxu0 %v1240_v4  ;;  %1077 = vmatpush1.bf16.msra.mxu1 %v1242_v5  ;;  %v300_v4 = vld [vmem:[#allocation7 + $0x3f8] sm:$0xff]  ;;  %v1304_v5 = vcombine.low %v287_v57, %v291_v58 }
  0x8c   :  { %1037 = vmatprep.subr.bf16.mxu0 %v1249_v51  ;;  %1078 = vmatprep.subr.bf16.mxu1 %v1251_v6  ;;  %v1306_v51 = vcombine.low %v288_v59, %v292_v60  ;;  %v1313_v6 = vcombine.high %v295_v1, %v299_v2  ;;  %v1315_v7 = vcombine.high %v296_v3, %v300_v4 }
  0x8d   :  { %v1314_v8 = vcombine.low %v296_v3, %v300_v4 }
  0x8f   :  { %1038 = vmatpush1.bf16.msra.mxu0 %v1248_v61  ;;  %1079 = vmatpush1.bf16.msra.mxu1 %v1250_v10 }
  0x90   :  { %1039 = vmatprep.subr.bf16.mxu0 %v1257_v11  ;;  %1080 = vmatprep.subr.bf16.mxu1 %v1259_v12 }
  0x93   :  { %1040 = vmatpush1.bf16.msra.mxu0 %v1256_v18  ;;  %1081 = vmatpush1.bf16.msra.mxu1 %v1258_v20 }
  0x94   :  { %1041 = vmatprep.subr.bf16.mxu0 %v1265_v22  ;;  %1082 = vmatprep.subr.bf16.mxu1 %v1267_v54 }
  0x97   :  { %1042 = vmatpush1.bf16.msra.mxu0 %v1264_v26  ;;  %1083 = vmatpush1.bf16.msra.mxu1 %v1266_v27 }
  0x98   :  { %1043 = vmatprep.subr.bf16.mxu0 %v1273_v28  ;;  %1084 = vmatprep.subr.bf16.mxu1 %v1275_v29 }
  0x9b   :  { %1044 = vmatpush1.bf16.msra.mxu0 %v1272_v35  ;;  %1085 = vmatpush1.bf16.msra.mxu1 %v1274_v36 }
  0x9c   :  { %1045 = vmatprep.subr.bf16.mxu0 %v1281_v37  ;;  %1086 = vmatprep.subr.bf16.mxu1 %v1283_v38 }
  0x9f   :  { %1046 = vmatpush1.bf16.msra.mxu0 %v1280_v44  ;;  %1087 = vmatpush1.bf16.msra.mxu1 %v1282_v45 }
  0xa0   :  { %1047 = vmatprep.subr.bf16.mxu0 %v1289_v21  ;;  %1088 = vmatprep.subr.bf16.mxu1 %v1291_v46 }
  0xa3   :  { %1048 = vmatpush1.bf16.msra.mxu0 %v1288_v52  ;;  %1089 = vmatpush1.bf16.msra.mxu1 %v1290_v56 }
  0xa4   :  { %1049 = vmatprep.subr.bf16.mxu0 %v1297_v40  ;;  %1090 = vmatprep.subr.bf16.mxu1 %v1299_v55 }
  0xa7   :  { %1050 = vmatpush1.bf16.msra.mxu0 %v1296_v33  ;;  %1091 = vmatpush1.bf16.msra.mxu1 %v1298_v62 }
  0xa8   :  { %1051 = vmatprep.subr.bf16.mxu0 %v1305_v63  ;;  %1092 = vmatprep.subr.bf16.mxu1 %v1307_v0 }
  0xab   :  { %1052 = vmatpush1.bf16.msra.mxu0 %v1304_v5  ;;  %1093 = vmatpush1.bf16.msra.mxu1 %v1306_v51 }
  0xac   :  { %1053 = vmatprep.subr.bf16.mxu0 %v1313_v6  ;;  %1094 = vmatprep.subr.bf16.mxu1 %v1315_v7 }
  0xaf   :  { %1054 = vmatpush1.bf16.msra.mxu0 %v1312_v53  ;;  %1095 = vmatpush1.bf16.msra.mxu1 %v1314_v8 }
  0xb2   :  { %1056 = vmatmul.mubr.bf16.vlgmr.msra.gmra.mrb[4].mxu0 %v1553_v14  ;;  %1097 = vmatmul.mubr.bf16.vlgmr.msra.gmra.mrb[4].mxu1 %v1553_v14 }
 0x145   :  { %v975_v9 = vpop.f32.mrb[0].mxu0  ;;  %v1016_v10 = vpop.f32.mrb[0].mxu1 }
 0x146   :  { %v1316_v61 = vmul.f32 -1.442695, %v975_v9  ;;  %v977_v11 = vpop.f32.mrb[1].mxu0  ;;  %v1318_v12 = vmul.f32 -1.442695, %v1016_v10  ;;  %v1018_v15 = vpop.f32.mrb[1].mxu1 }
 0x147   :  { %v1317_v13 = vmul.f32 -1.442695, %v977_v11  ;;  %v979_v16 = vpop.f32.mrb[2].mxu0  ;;  %v1319_v17 = vmul.f32 -1.442695, %v1018_v15  ;;  %v1020_v18 = vpop.f32.mrb[2].mxu1 }
 0x148   :  { %1329 = vpow2.f32 %v1316_v61  ;;  %v980_v20 = vpop.f32.mrb[3].mxu0  ;;  %v1021_v22 = vpop.f32.mrb[3].mxu1 }
 0x149   :  { %1331 = vpow2.f32 %v1318_v12 }
 0x14a   :  { %1333 = vpow2.f32 %v1317_v13 }
 0x14b   :  { %1335 = vpow2.f32 %v1319_v17 }
 0x152   :  { %v1330_v54 = vpop.eup %1329 }
 0x153   :  { %v1332_v19 = vpop.eup %1331  ;;  %v1129_v23 = vadd.f32 1.0, %v1330_v54 }
 0x154   :  { %v1334_v14 = vpop.eup %1333  ;;  %v1131_v24 = vadd.f32 1.0, %v1332_v19 }
 0x155   :  { %v1336_v25 = vpop.eup %1335  ;;  %1337 = vrcp.f32 %v1129_v23  ;;  %v1130_v26 = vadd.f32 1.0, %v1334_v14 }
 0x156   :  { %1339 = vrcp.f32 %v1131_v24  ;;  %v1132_v27 = vadd.f32 1.0, %v1336_v25 }
 0x157   :  { %1341 = vrcp.f32 %v1130_v26 }
 0x158   :  { %1343 = vrcp.f32 %v1132_v27 }
 0x15f   :  { %v1338_v28 = vpop.eup %1337 }
 0x160   :  { %v1340_v29 = vpop.eup %1339 }
 0x161   :  { %v1342_v30 = vpop.eup %1341 }
 0x162   :  { %v1344_v31 = vpop.eup %1343  ;;  %v1161_v32 = vcombine.low %v1338_v28, %v1342_v30 }
 0x163   :  { %v1162_v34 = vcombine.low %v1340_v29, %v1344_v31 }
 0x164   :  { %1169 = vst [vmem:[%s1577_s4] sm:$0xff] %v1161_v32 }
 0x165   :  { %1170 = vst [vmem:[%s1577_s4 + $0x8] sm:$0xff] %v1162_v34 }
 0x185   :  { %v1057_v35 = vpop.f32.mrb[4].mxu0  ;;  %v1098_v37 = vpop.f32.mrb[4].mxu1 }
 0x186   :  { %v1320_v36 = vmul.f32 -1.442695, %v1057_v35  ;;  %v1059_v38 = vpop.f32.mrb[5].mxu0  ;;  %v1322_v39 = vmul.f32 -1.442695, %v1098_v37  ;;  %v1100_v42 = vpop.f32.mrb[5].mxu1 }
 0x187   :  { %v1321_v41 = vmul.f32 -1.442695, %v1059_v38  ;;  %v1061_v43 = vpop.f32.mrb[6].mxu0  ;;  %v1323_v44 = vmul.f32 -1.442695, %v1100_v42  ;;  %v1102_v45 = vpop.f32.mrb[6].mxu1 }
 0x188   :  { %1345 = vpow2.f32 %v1320_v36  ;;  %v1062_v21 = vpop.f32.mrb[7].mxu0  ;;  %v1103_v46 = vpop.f32.mrb[7].mxu1 }
 0x189   :  { %1347 = vpow2.f32 %v1322_v39 }
 0x18a   :  { %1349 = vpow2.f32 %v1321_v41 }
 0x18b   :  { %1351 = vpow2.f32 %v1323_v44 }
 0x192   :  { %v1346_v47 = vpop.eup %1345 }
 0x193   :  { %v1348_v48 = vpop.eup %1347  ;;  %v1133_v49 = vadd.f32 1.0, %v1346_v47 }
 0x194   :  { %v1350_v50 = vpop.eup %1349  ;;  %v1135_v52 = vadd.f32 1.0, %v1348_v48 }
 0x195   :  { %v1352_v56 = vpop.eup %1351  ;;  %1353 = vrcp.f32 %v1133_v49  ;;  %v1134_v40 = vadd.f32 1.0, %v1350_v50 }
 0x196   :  { %1355 = vrcp.f32 %v1135_v52  ;;  %v1136_v55 = vadd.f32 1.0, %v1352_v56 }
 0x197   :  { %1357 = vrcp.f32 %v1134_v40 }
 0x198   :  { %1359 = vrcp.f32 %v1136_v55 }
 0x19f   :  { %v1354_v57 = vpop.eup %1353 }
 0x1a0   :  { %v1356_v58 = vpop.eup %1355 }
 0x1a1   :  { %v1358_v59 = vpop.eup %1357 }
 0x1a2   :  { %v1360_v60 = vpop.eup %1359  ;;  %v1163_v33 = vcombine.low %v1354_v57, %v1358_v59 }
 0x1a3   :  { %v1164_v62 = vcombine.low %v1356_v58, %v1360_v60 }
 0x1a4   :  { %1171 = vst [vmem:[%s1577_s4 + $0x10] sm:$0xff] %v1163_v33 }
 0x1a5   :  { %1172 = vst [vmem:[%s1577_s4 + $0x18] sm:$0xff] %v1164_v62 }
 0x1a6   :  { %1177 = vsyncpa [#allocation3], 1 }
 0x1a7   :  { %1178 = vsyncpa [#allocation4], 1 }
 0x1a8   :  { %1179 = vsyncpa [#allocation6], 1 }

</bundles_post_ra>
